<compile_context>
chip_gen: v7x
topology: tpu7x:2x2x1
jax: 0.10.0
libtpu: 0.0.40
codegen_flags: <defaults>
</compile_context>

<pallas_src>
import functools

import jax
import jax.numpy as jnp
import numpy as np
from jax import lax
from jax.experimental import pallas as pl
from jax.experimental.pallas import tpu as pltpu


def _round_up(x, m):
    return (x + m - 1) // m * m


# ---------------------------------------------------------------------------
# One-time probe of pltpu.roll's rotation convention (cached per process).
# ---------------------------------------------------------------------------
_ROLL_DIRECTION = {}


def _roll_matches_jnp():
    """True iff pltpu.roll(x, s)[..., i] == x[..., i - s] (jnp.roll convention)."""
    if "jnp" not in _ROLL_DIRECTION:
        def probe_kernel(x_ref, o_ref):
            o_ref[...] = pltpu.roll(x_ref[...], shift=1, axis=1)

        x = jnp.arange(8 * 128, dtype=jnp.float32).reshape(8, 128)
        y = pl.pallas_call(
            probe_kernel, out_shape=jax.ShapeDtypeStruct((8, 128), jnp.float32)
        )(x)
        y = np.asarray(jax.block_until_ready(y))
        xn = np.asarray(x)
        if np.array_equal(y, np.roll(xn, 1, axis=1)):
            _ROLL_DIRECTION["jnp"] = True
        elif np.array_equal(y, np.roll(xn, -1, axis=1)):
            _ROLL_DIRECTION["jnp"] = False
        else:
            raise AssertionError("pltpu.roll produced an unexpected permutation")
    return _ROLL_DIRECTION["jnp"]


# ---------------------------------------------------------------------------
# Kernel
# ---------------------------------------------------------------------------
def fuzzy_nand_kernel(x_ref, w_ref, sel_ref, b_ref, o_ref, *, K, CH, NCH):
    # x_ref:   (TB, N*K)  lane-dense batch block
    # w_ref:   (1,  N*K)  resident flattened weights
    # sel_ref: (N*K, N)   resident one-hot readout matrix (exact 0/1 matmul)
    # b_ref:   (1,  N)    resident biases
    # o_ref:   (TB, N)
    wf = w_ref[...].astype(jnp.float32)   # hoisted out of the chunk loop
    bf = b_ref[...].astype(jnp.float32)
    sel = sel_ref[...]

    def chunk(c, carry):
        r0 = pl.multiple_of(c * CH, CH)
        x = x_ref[pl.ds(r0, CH), :].astype(jnp.float32)     # (CH, N*K)
        t = 1.0 - x * wf                                    # full-lane VPU op

        # Product over each contiguous K-lane group via a shift-and-multiply
        # tree (XLU rolls + VPU multiplies).  `pw` holds products of windows of
        # length `wlen`; `r` accumulates the set bits of K, so this also works
        # for non-power-of-two K.  For K = 32 it is the plain 5-level roll tree.
        r = None
        pw = t
        wlen = 1
        consumed = 0
        rem = K
        while rem:
            if rem & 1:
                part = pw if consumed == 0 else pltpu.roll(pw, shift=consumed, axis=1)
                r = part if r is None else r * part
                consumed += wlen
            rem >>= 1
            if rem:
                pw = pw * pltpu.roll(pw, shift=wlen, axis=1)
                wlen *= 2

        # One lane per K-lane group now holds that group's product; gather the
        # N of them exactly with a tiny one-hot selection matmul on the MXU.
        p = jnp.dot(r, sel, preferred_element_type=jnp.float32)   # (CH, N)
        o_ref[pl.ds(r0, CH), :] = (p + bf).astype(o_ref.dtype)
        return carry

    lax.fori_loop(0, NCH, chunk, 0)


# ---------------------------------------------------------------------------
# Wrapper
# ---------------------------------------------------------------------------
def linear_fuzzy_nand(activations, weights, biases, *, target_tile_bytes=8 << 20):
    """activations: (B, N, K), weights: (N, K), biases: (N,) -> (B, N)."""
    B, N, K = activations.shape
    assert weights.shape == (N, K) and biases.shape == (N,)
    W = N * K

    # Free, contiguous reshapes -> lane-dense (n-major, k-minor) layout.
    x2 = activations.reshape(B, W)
    w2 = weights.reshape(1, W)
    b2 = biases.reshape(1, N)

    itemsize = jnp.dtype(activations.dtype).itemsize
    pack = {4: 8, 2: 16, 1: 32}.get(itemsize, 8)    # sublane packing per dtype
    out_dtype = jnp.result_type(activations.dtype, weights.dtype, biases.dtype)

    # ---- batch tile TB: multi-MiB blocks amortize the ~0.35us/step overhead ----
    row_bytes = W * itemsize
    tile_bytes = min(int(target_tile_bytes), 12 << 20)   # 2x double-buffer stays well under v7x 64 MiB/TC
    TB = max(pack, (tile_bytes // row_bytes) // pack * pack)
    b_ceil = _round_up(B, pack)
    TB = min(TB, b_ceil)
    # v7x megacore: if the whole batch fits in one block, split so G >= 2 and
    # both TensorCores get a block (the grid axis is "parallel").
    if TB >= b_ceil and B > pack:
        TB = max(pack, _round_up(pl.cdiv(B, 2), pack))
    # In-kernel chunking: CH rows at a time keeps live f32 temporaries ~0.5-1 MiB
    # regardless of TB; TB is rounded down to a multiple of CH.
    CH = min(TB, 64 * pack)
    TB = max(CH, (TB // CH) * CH)
    NCH = TB // CH
    G = pl.cdiv(B, TB)          # ragged last block handled by Pallas (masked writes)

    # Readout lane within each K-lane group (depends on pltpu.roll convention).
    off = (K - 1) if _roll_matches_jnp() else 0
    sel = (
        jnp.zeros((W, N), jnp.float32)
        .at[jnp.arange(N) * K + off, jnp.arange(N)]
        .set(1.0)
    )

    # ---- VMEM budget from true padded layout sizes ----
    out_itemsize = jnp.dtype(out_dtype).itemsize
    vmem_needed = (
        2 * TB * W * itemsize                                 # double-buffered input blocks (lane-dense, exact)
        + 2 * TB * _round_up(N, 128) * out_itemsize           # double-buffered output blocks (lanes pad to 128)
        + 2 * (W * jnp.dtype(weights.dtype).itemsize + W * N * 4 + N * 4)  # resident params + selection
        + 3 * CH * W * 4                                      # live f32 temporaries inside the chunk loop
    )
    vmem_limit = int(min(max(vmem_needed + (4 << 20), 16 << 20), 48 << 20))

    kernel = functools.partial(fuzzy_nand_kernel, K=K, CH=CH, NCH=NCH)

    return pl.pallas_call(
        kernel,
        out_shape=jax.ShapeDtypeStruct((B, N), out_dtype),
        grid_spec=pltpu.PrefetchScalarGridSpec(
            num_scalar_prefetch=0,
            grid=(G,),
            in_specs=[
                pl.BlockSpec((TB, W), lambda g: (g, 0)),   # lane-dense batch block
                pl.BlockSpec((1, W), lambda g: (0, 0)),    # resident weights
                pl.BlockSpec((W, N), lambda g: (0, 0)),    # resident selection matrix
                pl.BlockSpec((1, N), lambda g: (0, 0)),    # resident biases
            ],
            out_specs=pl.BlockSpec((TB, N), lambda g: (g, 0)),
        ),
        compiler_params=pltpu.CompilerParams(
            dimension_semantics=("parallel",),             # independent batch blocks (megacore)
            vmem_limit_bytes=vmem_limit,
        ),
    )(x2, w2, sel, b2)


def linear_fuzzy_nand_ref(activations, weights, biases):
    t = 1.0 - activations.astype(jnp.float32) * weights[None].astype(jnp.float32)
    return jnp.prod(t, axis=-1) + biases[None].astype(jnp.float32)


if __name__ == "__main__":
    # Module config: input_shape = (N, K); activations are (B, N, K).
    N, K = 8, 32
    weights = jnp.full((N, K), 1.0 / K, dtype=jnp.float32)   # matches torch init
    biases = jnp.zeros((N,), dtype=jnp.float32)
    key = jax.random.PRNGKey(0)

    # Case 1: tiny batch -> single (ragged) block.
    x1 = jax.random.normal(key, (2, N, K), dtype=jnp.float32)
    out1 = jax.block_until_ready(linear_fuzzy_nand(x1, weights, biases))
    ref1 = linear_fuzzy_nand_ref(x1, weights, biases)
    np.testing.assert_allclose(np.asarray(out1), np.asarray(ref1), rtol=1e-5, atol=1e-6)

    # Case 2: B % TB != 0 with tiny tiles -> multi-step grid + masked ragged tail.
    x2 = jax.random.normal(jax.random.PRNGKey(1), (50, N, K), dtype=jnp.float32)
    out2 = jax.block_until_ready(
        linear_fuzzy_nand(x2, weights, biases, target_tile_bytes=16 * 1024)
    )
    ref2 = linear_fuzzy_nand_ref(x2, weights, biases)
    np.testing.assert_allclose(np.asarray(out2), np.asarray(ref2), rtol=1e-5, atol=1e-6)

    # Case 3: default large-tile path -> G >= 2 megacore split + in-kernel chunk loop.
    x3 = jax.random.normal(jax.random.PRNGKey(2), (2048, N, K), dtype=jnp.float32)
    out3 = jax.block_until_ready(linear_fuzzy_nand(x3, weights, biases))
    ref3 = linear_fuzzy_nand_ref(x3, weights, biases)
    np.testing.assert_allclose(np.asarray(out3), np.asarray(ref3), rtol=1e-5, atol=1e-6)

    # Case 4: bf16 activations from the producer (no wrapper-side cast), f32 params;
    # TB rounds to the bf16 sublane packing (16) and the grid is ragged.
    x4 = jax.random.normal(jax.random.PRNGKey(3), (20, N, K), dtype=jnp.float32).astype(jnp.bfloat16)
    out4 = jax.block_until_ready(linear_fuzzy_nand(x4, weights, biases))
    ref4 = linear_fuzzy_nand_ref(x4, weights, biases)
    np.testing.assert_allclose(np.asarray(out4), np.asarray(ref4), rtol=1e-5, atol=1e-6)

    print("KERNEL_OK")
</pallas_src>

<mosaic_0001>
module attributes {stable_mosaic.version = 11 : i64} {
  func.func @probe_kernel(%arg0: memref<8x128xf32, #tpu.memory_space<vmem>>, %arg1: memref<8x128xf32, #tpu.memory_space<vmem>>) attributes {dimension_semantics = [], scalar_prefetch = 0 : i64, scratch_operands = 0 : i64, tpu.core_type = #tpu.core_type<tc>} {
    %c0 = arith.constant 0 : index
    %c0_0 = arith.constant 0 : index
    %0 = vector.load %arg0[%c0, %c0_0] : memref<8x128xf32, #tpu.memory_space<vmem>>, vector<8x128xf32>
    %c1_i32 = arith.constant 1 : i32
    %1 = tpu.dynamic_rotate %0 by %c1_i32 dim 1 : vector<8x128xf32>, i32 -> vector<8x128xf32>
    %c0_1 = arith.constant 0 : index
    %c0_2 = arith.constant 0 : index
    %2 = vector.load %arg1[%c0_1, %c0_2] : memref<8x128xf32, #tpu.memory_space<vmem>>, vector<8x128xf32>
    tpu.vector_store %arg1[%c0_1, %c0_2], %1 {strides = array<i32>} : memref<8x128xf32, #tpu.memory_space<vmem>>, vector<8x128xf32>,
    return
  }
}

</mosaic_0001>

<bundles_post_ra>
// kernel: tpu_custom_call.1
= control target key start
LH: loop header
LB: loop body
LE: loop exit
PB: predicated region body
PF: predicated region fallthrough
CT: control target
= control target key end

     0   :  { %6 = vsyncpa [#allocation3], 0  ;;  %s128_s0 = inlined_call_operand.hbm [shape: f32[8,128], index: 0, kind: input, shape index: {}]   ;;  %s129_s1 = inlined_call_operand.hbm [shape: f32[8,128], index: 1, kind: output, shape index: {}]  }
   0x1   :  { %7 = vsyncpa [#allocation4], 0  ;;  %s91_s6 = smov [#allocation2]   ;;  %s43_s10 = scalar_lea.hbm %s128_s0, 128 }
   0x2   :  { %s14_s7 = sshll.u32 %s91_s6, 4  ;;  %p44_p0 = scmp.ne.s32.totalorder %s128_s0, %s43_s10  ;;  %s15_s7 = int_to_ptr.vmem [resolvable:$true] %s14_s7 }
   0x3   :  { %p47_p1 = scmp.lt.u32.totalorder %s43_s10, %s128_s0 }
   0x5   :  { %p49_p2 = pnand %p47_p1, %p44_p0 }
   0x7   :  { %52 = shalt.err (!%p49_p2)
}
   0x8   :  { %s53_s15 = scalar_lea.vmem %s15_s7, 128  ;;  %p58_p4 = scmp.lt.s32.totalorder %s15_s7, %s15_s7 }
   0x9   :  { %p54_p3 = scmp.ne.s32.totalorder %s15_s7, %s53_s15  ;;  %p59_p5 = scmp.lt.s32.totalorder %s53_s15, %s53_s15 }
   0xb   :  { %p60_p6 = por %p59_p5, %p58_p4 }
   0xd   :  { %p61_p7 = pnand %p60_p6, %p54_p3 }
   0xf   :  { %64 = shalt.err (!%p61_p7)
}
  0x10   :  { %17 = dma.hbm_to_vmem [thread:$0]  %s128_s0, 128, %s15_s7, [#allocation3]  }
  0x11   :  { %87 = dma.done.wait [#allocation3], 128  }
  0x12   :  { %88 = vsyncadd [#allocation3], 4294967168  ;;  %v21_v0 = vld [vmem:[#allocation2] sm:$0xff]  ;;  %s92_s18 = smov 1   ;;  %s93_s19 = smov [#allocation5]  }
  0x13   :  { %22 = vrot.lane.b32.xlu0 %v21_v0, %s92_s18  ;;  %s31_s20 = sshll.u32 %s93_s19, 4  ;;  %s32_s20 = int_to_ptr.vmem [resolvable:$true] %s31_s20 }
  0x14   :  { %s65_s21 = scalar_lea.vmem %s32_s20, 128  ;;  %p70_p9 = scmp.lt.s32.totalorder %s32_s20, %s32_s20 }
  0x15   :  { %p66_p8 = scmp.ne.s32.totalorder %s32_s20, %s65_s21  ;;  %p71_p10 = scmp.lt.s32.totalorder %s65_s21, %s65_s21 }
  0x17   :  { %p72_p11 = por %p71_p10, %p70_p9 }
  0x19   :  { %p73_p12 = pnand %p72_p11, %p66_p8 }
  0x85   :  { %v23_v1 = vpop.permute.xlu0 %22 }
  0x86   :  { %24 = vst [vmem:[#allocation5] sm:$0xff] %v23_v1 }
  0x87   :  { %76 = shalt.err (!%p73_p12)
}
  0x88   :  { %s77_s0 = scalar_lea.hbm %s129_s1, 128 }
  0x89   :  { %p78_p13 = scmp.ne.s32.totalorder %s129_s1, %s77_s0  ;;  %p81_p0 = scmp.lt.u32.totalorder %s77_s0, %s129_s1 }
  0x8b   :  { %p83_p1 = pnand %p81_p0, %p78_p13 }
  0x8d   :  { %86 = shalt.err (!%p83_p1)
}
  0x8e   :  { %34 = dma.vmem_to_hbm [thread:$0]  %s32_s20, 128, %s129_s1, [#allocation4]  }
  0x8f   :  { %89 = dma.done.wait [#allocation4], 128  }
  0x90   :  { %90 = vsyncadd [#allocation4], 4294967168 }
  0x91   :  { %38 = vsyncpa [#allocation3], 1 }
  0x92   :  { %39 = vsyncpa [#allocation4], 1 }

</bundles_post_ra>
